<compile_context>
chip_gen: v7x
topology: tpu7x:2x2x1
jax: 0.10.0
libtpu: 0.0.40
codegen_flags: <defaults>
</compile_context>

<pallas_src>
import jax
import jax.numpy as jnp
from jax import lax
from jax.experimental import pallas as pl
from jax.experimental.pallas import tpu as pltpu


def _round_up(v, m):
    return ((v + m - 1) // m) * m


def _cdiv(a, b):
    return (a + b - 1) // b


def _vmem_capacity_bytes():
    """Generation-aware VMEM size (128 MiB on v5e/v6e, 64 MiB per-TC on v7x)."""
    try:
        return int(pltpu.get_tpu_info().vmem_capacity_bytes)
    except Exception:
        return 64 * 1024 * 1024  # conservative fallback (v7x-sized)


def _make_kernel(apply_post: bool, single_k: bool):
    """Mode-specialized kernel body (no dead inputs / dead multiplies)."""

    def kernel(*refs):
        if apply_post:
            x_ref, w_ref, b_ref, post_ref = refs[:4]
            rest = refs[4:]
        else:
            x_ref, w_ref, b_ref = refs[:3]
            post_ref = None
            rest = refs[3:]

        # Contract over the K (input-feature) dim of both operands:
        # x[m,k] . w[n,k] -> (TB, TO). Transposed-RHS form is MXU-native
        # (no in-kernel weight transpose).
        part = lax.dot_general(
            x_ref[...], w_ref[...],
            dimension_numbers=(((1,), (1,)), ((), ())),
            preferred_element_type=jnp.float32)

        def finalize(acc):
            y = acc + b_ref[...]                      # (1, TO) f32 broadcast
            if apply_post:
                y = y * post_ref[...]                 # (1, TO) f32 broadcast
            return y

        if single_k:
            # Whole contraction fits one K tile: skip the accumulator round-trip.
            (o_ref,) = rest
            o_ref[...] = finalize(part).astype(o_ref.dtype)
            return

        o_ref, acc_ref = rest
        k = pl.program_id(2)

        @pl.when(k == 0)
        def _():
            acc_ref[...] = jnp.zeros_like(acc_ref)

        acc_ref[...] += part

        @pl.when(k == pl.num_programs(2) - 1)
        def _():
            o_ref[...] = finalize(acc_ref[...]).astype(o_ref.dtype)

    return kernel


def synapse_plasticity_forward(x, weight, bias, pre_scale=None, ltd_scale=None,
                               post_scale=None, nt_sp_both="both",
                               use_bf16_matmul=False):
    """Pallas forward for the linear (2-D weight) variant of synapse_plasticity."""
    if weight.ndim != 2:
        # TODO(synk): conv2d variant (weight.dim() == 4) not implemented here.
        raise NotImplementedError("synapse_plasticity Pallas kernel: only the linear "
                                  "(2-D weight) path is implemented")
    B, I = x.shape
    O, I_w = weight.shape
    assert I == I_w, "input feature mismatch"

    apply_pre = (nt_sp_both != "nt") and (pre_scale is not None) and (ltd_scale is not None)
    apply_post = (nt_sp_both in ("nt", "both")) and (post_scale is not None)

    out_dtype = jnp.promote_types(x.dtype, weight.dtype)
    compute_dtype = out_dtype
    if use_bf16_matmul and compute_dtype == jnp.float32:
        compute_dtype = jnp.bfloat16

    itemsize = jnp.dtype(compute_dtype).itemsize
    out_isize = jnp.dtype(out_dtype).itemsize
    sub = {4: 8, 2: 16, 1: 32}.get(itemsize, 8)     # sublane packing for compute dtype

    # ---- Generation-aware VMEM budget (tiles) and compiler limit. ----
    cap = _vmem_capacity_bytes()
    budget = int(cap * 0.40)          # ~25 MiB on v7x, ~51 MiB on v5e/v6e
    vmem_limit = int(cap * 0.75)      # 48 MiB on v7x, 96 MiB on v5e/v6e

    TB = min(_round_up(B, sub), 512)
    TO = min(_round_up(O, 128), 512)
    Ip = _round_up(I, 128)            # lane-aligned contraction extent

    def _footprint(tb, to, tk):
        # double-buffered pipeline tiles + rows, plus single-buffered f32
        # accumulator and the f32 finalize temporary.
        tiles = tb * tk * itemsize + to * tk * itemsize + tb * to * out_isize + 4 * to * 4
        return 2 * tiles + 2 * tb * to * 4

    # K tile: the largest 128-multiple divisor of Ip that fits the budget (so the
    # contraction dim never forces TO/TB down and never needs extra padding).
    TK_CAP = 2048
    TK = 128
    nk = Ip // 128
    for d in range(nk, 0, -1):
        tk = d * 128
        if nk % d == 0 and tk <= TK_CAP and _footprint(TB, TO, tk) <= budget:
            TK = tk
            break
    # Escape hatches (rarely hit given the budget): shrink TO, then TB.
    while _footprint(TB, TO, TK) > budget and TO > 128:
        TO = max(128, (TO // 2) // 128 * 128)
    while _footprint(TB, TO, TK) > budget and TB > sub:
        TB = max(sub, (TB // 2) // sub * sub)

    gB = _cdiv(B, TB)
    gO = _cdiv(O, TO)
    # Guarantee >=2 parallel grid points when possible so v7x's two TensorCores
    # both get work (harmless single extra step on v5e/v6e).
    if gB * gO == 1:
        if TO >= 256:
            TO = max(128, (TO // 2) // 128 * 128)
        elif TB >= 2 * sub:
            TB = max(sub, (TB // 2) // sub * sub)
        gB = _cdiv(B, TB)
        gO = _cdiv(O, TO)
    gK = Ip // TK
    single_k = (gK == 1)

    # ---- Grid order: stream the dominant operand from HBM the fewest times. ----
    x_stream = B * Ip * itemsize
    w_stream = O * Ip * itemsize
    cost_batch_outer = x_stream + w_stream * gB   # x resident per i, W re-read gB times
    cost_out_outer = w_stream + x_stream * gO     # W resident per j, x re-read gO times
    weight_major = cost_out_outer <= cost_batch_outer

    if weight_major:
        grid = (gO, gB, gK)
        x_map = lambda j, i, k: (i, k)
        w_map = lambda j, i, k: (j, k)
        row_map = lambda j, i, k: (0, j)
        out_map = lambda j, i, k: (i, j)
    else:
        grid = (gB, gO, gK)
        x_map = lambda i, j, k: (i, k)
        w_map = lambda i, j, k: (j, k)
        row_map = lambda i, j, k: (0, j)
        out_map = lambda i, j, k: (i, j)

    # ---- Operand prep. Only the contraction (I) dim is ever zero-padded; B and O
    # edges are handled by the cdiv grid with masked edge loads/stores. ----
    if apply_pre:
        # presynapse.scale * LTD_LTP.scale folded onto x once (hoisted out of the
        # per-tile kernel body); equivalent to scaling W's input columns.
        s = pre_scale.astype(jnp.float32) * ltd_scale.astype(jnp.float32)
        xk = x.astype(jnp.float32) * s[None, :]
    else:
        xk = x
    xk = xk.astype(compute_dtype)
    wk = weight.astype(compute_dtype)
    if Ip != I:
        xk = jnp.pad(xk, ((0, 0), (0, Ip - I)))
        wk = jnp.pad(wk, ((0, 0), (0, Ip - I)))

    Orow = _round_up(O, TO)  # bias / post rows padded to a TO multiple (tiny)
    if bias is None:
        b_row = jnp.zeros((1, Orow), jnp.float32)
    else:
        b_row = jnp.zeros((1, Orow), jnp.float32).at[0, :O].set(bias.astype(jnp.float32))

    args = [xk, wk, b_row]
    in_specs = [
        pl.BlockSpec((TB, TK), x_map),    # x tile
        pl.BlockSpec((TO, TK), w_map),    # weight tile (transposed-RHS contraction)
        pl.BlockSpec((1, TO), row_map),   # bias row
    ]
    if apply_post:
        p_row = jnp.ones((1, Orow), jnp.float32).at[0, :O].set(post_scale.astype(jnp.float32))
        args.append(p_row)
        in_specs.append(pl.BlockSpec((1, TO), row_map))

    scratch = [] if single_k else [pltpu.VMEM((TB, TO), jnp.float32)]

    out = pl.pallas_call(
        _make_kernel(apply_post, single_k),
        out_shape=jax.ShapeDtypeStruct((B, O), out_dtype),
        grid_spec=pltpu.PrefetchScalarGridSpec(
            num_scalar_prefetch=0,
            grid=grid,
            in_specs=in_specs,
            out_specs=pl.BlockSpec((TB, TO), out_map),
            scratch_shapes=scratch,
        ),
        compiler_params=pltpu.CompilerParams(
            dimension_semantics=("parallel", "parallel", "arbitrary"),
            vmem_limit_bytes=vmem_limit,
        ),
    )(*args)
    return out


def _reference(x, weight, bias, pre_scale, ltd_scale, post_scale, nt_sp_both="both"):
    """Plain-JAX mirror of the PyTorch forward (linear path)."""
    if nt_sp_both == "nt":
        y = x @ weight.T + bias
        return y * post_scale
    w = weight * (pre_scale * ltd_scale)   # scale weight columns (input dim)
    y = x @ w.T + bias
    if nt_sp_both == "both":
        y = y * post_scale
    return y


def _run_case(key, B, I, O):
    kx, kw, kb, kpre, kltd, kpost = jax.random.split(key, 6)
    x = jax.random.normal(kx, (B, I), jnp.float32)
    weight = jax.random.normal(kw, (O, I), jnp.float32) * 0.1
    bias = jax.random.normal(kb, (O,), jnp.float32) * 0.01
    # nn.Parameter inits to ones; perturb deterministically so scaling is exercised.
    pre_scale = 1.0 + 0.1 * jax.random.normal(kpre, (I,), jnp.float32)    # presynapse.scale
    ltd_scale = 1.0 + 0.1 * jax.random.normal(kltd, (I,), jnp.float32)    # LTD_LTP.scale
    post_scale = 1.0 + 0.1 * jax.random.normal(kpost, (O,), jnp.float32)  # postsynapse.scale

    ok = True
    for mode in ("both", "nt", "sp"):
        out = synapse_plasticity_forward(x, weight, bias, pre_scale, ltd_scale,
                                         post_scale, nt_sp_both=mode)
        out = jax.block_until_ready(out)
        ref = _reference(x, weight, bias, pre_scale, ltd_scale, post_scale,
                         nt_sp_both=mode)
        if not jnp.allclose(out, ref, atol=1e-3, rtol=1e-3):
            ok = False
    return ok


if __name__ == "__main__":
    key = jax.random.PRNGKey(0)
    k0, k1 = jax.random.split(key)

    ok = True
    # Small shape consistent with the module: batch=8, in_features=32, out_features=64.
    ok &= _run_case(k0, B=8, I=32, O=64)
    # Ragged shape exercising cdiv-edge masking (B, O) and I-only padding.
    ok &= _run_case(k1, B=100, I=160, O=200)

    if ok:
        print("KERNEL_OK")
</pallas_src>

<mosaic_0001>
module attributes {stable_mosaic.version = 11 : i64} {
  func.func @kernel(%arg0: i32, %arg1: i32, %arg2: i32, %arg3: memref<8x128xf32, #tpu.memory_space<vmem>>, %arg4: memref<128x128xf32, #tpu.memory_space<vmem>>, %arg5: memref<1x128xf32, #tpu.memory_space<vmem>>, %arg6: memref<1x128xf32, #tpu.memory_space<vmem>>, %arg7: memref<8x128xf32, #tpu.memory_space<vmem>>) attributes {dimension_semantics = [#tpu.dimension_semantics<parallel>, #tpu.dimension_semantics<parallel>, #tpu.dimension_semantics<arbitrary>], iteration_bounds = array<i64: 1, 1, 1>, scalar_prefetch = 0 : i64, scratch_operands = 0 : i64, tpu.core_type = #tpu.core_type<tc>, window_params = [{transform_indices = @transform_0, window_bounds = array<i64: 8, 128>}, {transform_indices = @transform_1, window_bounds = array<i64: 128, 128>}, {transform_indices = @transform_2, window_bounds = array<i64: 1, 128>}, {transform_indices = @transform_3, window_bounds = array<i64: 1, 128>}, {transform_indices = @transform_4, window_bounds = array<i64: 8, 128>}]} {
    %c0 = arith.constant 0 : index
    %c0_0 = arith.constant 0 : index
    %0 = vector.load %arg3[%c0, %c0_0] : memref<8x128xf32, #tpu.memory_space<vmem>>, vector<8x128xf32>
    %c0_1 = arith.constant 0 : index
    %c0_2 = arith.constant 0 : index
    %1 = vector.load %arg4[%c0_1, %c0_2] : memref<128x128xf32, #tpu.memory_space<vmem>>, vector<128x128xf32>
    %cst = arith.constant dense<0.000000e+00> : vector<8x128xf32>
    %2 = tpu.matmul %0, %1, %cst {dimension_numbers = #tpu.dot_dimension_numbers<[1], [1], [0], [0], [0, 0, 1, 0], [], []>} : vector<8x128xf32>, vector<128x128xf32>, vector<8x128xf32> -> vector<8x128xf32>
    %c0_3 = arith.constant 0 : index
    %c0_4 = arith.constant 0 : index
    %3 = vector.load %arg5[%c0_3, %c0_4] : memref<1x128xf32, #tpu.memory_space<vmem>>, vector<1x128xf32>
    %4 = vector.broadcast %3 : vector<1x128xf32> to vector<8x128xf32>
    %5 = arith.addf %2, %4 : vector<8x128xf32>
    %c0_5 = arith.constant 0 : index
    %c0_6 = arith.constant 0 : index
    %6 = vector.load %arg6[%c0_5, %c0_6] : memref<1x128xf32, #tpu.memory_space<vmem>>, vector<1x128xf32>
    %7 = vector.broadcast %6 : vector<1x128xf32> to vector<8x128xf32>
    %8 = arith.mulf %5, %7 : vector<8x128xf32>
    %c0_7 = arith.constant 0 : index
    %c0_8 = arith.constant 0 : index
    %9 = vector.load %arg7[%c0_7, %c0_8] : memref<8x128xf32, #tpu.memory_space<vmem>>, vector<8x128xf32>
    tpu.vector_store %arg7[%c0_7, %c0_8], %8 {strides = array<i32>} : memref<8x128xf32, #tpu.memory_space<vmem>>, vector<8x128xf32>,
    return
  }
  func.func @transform_0(%arg0: i32, %arg1: i32, %arg2: i32) -> (i32, i32) {
    %c0_i32 = arith.constant 0 : i32
    return %arg1, %arg2 : i32, i32
  }
  func.func @transform_1(%arg0: i32, %arg1: i32, %arg2: i32) -> (i32, i32) {
    %c0_i32 = arith.constant 0 : i32
    return %arg0, %arg2 : i32, i32
  }
  func.func @transform_2(%arg0: i32, %arg1: i32, %arg2: i32) -> (i32, i32) {
    %c0_i32 = arith.constant 0 : i32
    %c0_i32_0 = arith.constant 0 : i32
    return %c0_i32, %arg0 : i32, i32
  }
  func.func @transform_3(%arg0: i32, %arg1: i32, %arg2: i32) -> (i32, i32) {
    %c0_i32 = arith.constant 0 : i32
    %c0_i32_0 = arith.constant 0 : i32
    return %c0_i32, %arg0 : i32, i32
  }
  func.func @transform_4(%arg0: i32, %arg1: i32, %arg2: i32) -> (i32, i32) {
    %c0_i32 = arith.constant 0 : i32
    return %arg1, %arg0 : i32, i32
  }
}

</mosaic_0001>

<bundles_post_ra>
// kernel: tpu_custom_call.1
= control target key start
LH: loop header
LB: loop body
LE: loop exit
PB: predicated region body
PF: predicated region fallthrough
CT: control target
= control target key end

     0   :  { %9 = vsyncpa [#allocation3], 0  ;;  %s396_s0 = inlined_call_operand.hbm [shape: f32[8,128], index: 0, kind: input, shape index: {}]   ;;  %s397_s1 = inlined_call_operand.hbm [shape: f32[64,128], index: 1, kind: input, shape index: {}]   ;;  %s398_s2 = inlined_call_operand.vmem [shape: f32[1,128], index: 2, kind: input, shape index: {}]   ;;  %s399_s3 = inlined_call_operand.vmem [shape: f32[1,128], index: 3, kind: input, shape index: {}]   ;;  %s400_s4 = inlined_call_operand.hbm [shape: f32[8,64], index: 4, kind: output, shape index: {}]  }
   0x1   :  { %10 = vsyncpa [#allocation6], 0 }
   0x2   :  { %11 = vsyncpa [#allocation4], 0  ;;  %s321_s15 = smov [#allocation2]   ;;  %s249_s19 = scalar_lea.hbm %s396_s0, 128 }
   0x3   :  { %s18_s16 = sshll.u32 %s321_s15, 4  ;;  %p250_p0 = scmp.ne.s32.totalorder %s396_s0, %s249_s19  ;;  %s19_s16 = int_to_ptr.vmem [resolvable:$true] %s18_s16 }
   0x4   :  { %p253_p1 = scmp.lt.u32.totalorder %s249_s19, %s396_s0 }
   0x6   :  { %p255_p2 = pnand %p253_p1, %p250_p0 }
   0x8   :  { %258 = shalt.err (!%p255_p2)
}
   0x9   :  { %s259_s24 = scalar_lea.vmem %s19_s16, 128  ;;  %p264_p4 = scmp.lt.s32.totalorder %s19_s16, %s19_s16 }
   0xa   :  { %p260_p3 = scmp.ne.s32.totalorder %s19_s16, %s259_s24  ;;  %p265_p5 = scmp.lt.s32.totalorder %s259_s24, %s259_s24 }
   0xc   :  { %p266_p6 = por %p265_p5, %p264_p4 }
   0xe   :  { %p267_p7 = pnand %p266_p6, %p260_p3 }
  0x10   :  { %270 = shalt.err (!%p267_p7)
}
  0x11   :  { %21 = dma.hbm_to_vmem [thread:$0]  %s396_s0, 128, %s19_s16, [#allocation3]  }
  0x12   :  { %26 = vsyncadd [#allocation6], 1024  ;;  %s322_s27 = smov [#allocation5]   ;;  %s271_s5 = scalar_lea.hbm %s397_s1, 1024 }
  0x13   :  { %s27_s28 = sshll.u32 %s322_s27, 4  ;;  %p272_p8 = scmp.ne.s32.totalorder %s397_s1, %s271_s5  ;;  %s28_s28 = int_to_ptr.vmem [resolvable:$true] %s27_s28 }
  0x14   :  { %p275_p9 = scmp.lt.u32.totalorder %s271_s5, %s397_s1 }
  0x16   :  { %p277_p10 = pnand %p275_p9, %p272_p8 }
  0x18   :  { %280 = shalt.err (!%p277_p10)
}
  0x19   :  { %s281_s10 = scalar_lea.vmem %s28_s28, 1024  ;;  %s285_s0 = scalar_lea.vmem %s28_s28, 2048 }
  0x1a   :  { %p282_p11 = scmp.ne.s32.totalorder %s28_s28, %s281_s10  ;;  %p286_p12 = scmp.lt.s32.totalorder %s28_s28, %s28_s28 }
  0x1b   :  { %p287_p13 = scmp.lt.s32.totalorder %s285_s0, %s281_s10 }
  0x1d   :  { %p288_p0 = por %p287_p13, %p286_p12 }
  0x1f   :  { %p289_p1 = pnand %p288_p0, %p282_p11 }
  0x21   :  { %292 = shalt.err (!%p289_p1)
}
  0x22   :  { %s323_s11 = smov 128   ;;  %s324_s12 = smov 8  }
  0x23   :  { %33 = dma.hbm_to_vmem [thread:$0]  %s397_s1, 1024, %s28_s28, [#allocation6], %s323_s11, %s323_s11, %s324_s12  }
  0x24   :  { %315 = dma.done.wait [#allocation3], 128  }
  0x25   :  { %316 = vsyncadd [#allocation3], 4294967168 }
  0x26   :  { %317 = dma.done.wait [#allocation6], 2048  }
  0x27   :  { %318 = vsyncadd [#allocation6], 4294965248  ;;  %v325_v0 = vmov 0.0|0.0   ;;  %vm326_vm0 = vmmov 0   ;;  %v327_v1 = vmov 0.0   ;;  %v45_v2 = vld [vmem:[#allocation5] sm:$0xff] }
  0x28   :  { %217 = vmatprep.subr.bf16.mxu0 %v325_v0  ;;  %214 = vmatprep.mubr.msk.f32.mxu0 %vm326_vm0, %v327_v1  ;;  %v46_v3 = vld [vmem:[#allocation5 + $0x8] sm:$0xff]  ;;  %v47_v5 = vld [vmem:[#allocation5 + $0x10] sm:$0xff]  ;;  %v48_v6 = vld [vmem:[#allocation5 + $0x18] sm:$0xff]  ;;  %s328_s18 = smov [#allocation7]  }
  0x29   :  { %v218_v4 = vpack.c.bf16 %v46_v3, %v45_v2  ;;  %v221_v7 = vpack.c.bf16 %v48_v6, %v47_v5  ;;  %v49_v8 = vld [vmem:[#allocation5 + $0x20] sm:$0xff]  ;;  %v50_v9 = vld [vmem:[#allocation5 + $0x28] sm:$0xff]  ;;  %v51_v11 = vld [vmem:[#allocation5 + $0x30] sm:$0xff]  ;;  %s153_s19 = sshll.u32 %s328_s18, 4  ;;  %s154_s19 = int_to_ptr.vmem [resolvable:$true] %s153_s19 }
  0x2a   :  { %v224_v10 = vpack.c.bf16 %v50_v9, %v49_v8  ;;  %v52_v12 = vld [vmem:[#allocation5 + $0x38] sm:$0xff]  ;;  %v53_v14 = vld [vmem:[#allocation5 + $0x40] sm:$0xff]  ;;  %v54_v15 = vld [vmem:[#allocation5 + $0x48] sm:$0xff]  ;;  %s293_s20 = scalar_lea.vmem %s154_s19, 128  ;;  %p298_p3 = scmp.lt.s32.totalorder %s154_s19, %s154_s19 }
  0x2b   :  { %219 = vmatpush3.bf16.xpose.msra.mxu0 %v218_v4  ;;  %v227_v13 = vpack.c.bf16 %v52_v12, %v51_v11  ;;  %v230_v16 = vpack.c.bf16 %v54_v15, %v53_v14  ;;  %v55_v17 = vld [vmem:[#allocation5 + $0x50] sm:$0xff]  ;;  %v56_v18 = vld [vmem:[#allocation5 + $0x58] sm:$0xff]  ;;  %v57_v20 = vld [vmem:[#allocation5 + $0x60] sm:$0xff]  ;;  %p294_p2 = scmp.ne.s32.totalorder %s154_s19, %s293_s20  ;;  %p299_p4 = scmp.lt.s32.totalorder %s293_s20, %s293_s20 }
  0x2c   :  { %220 = vmatprep.subr.bf16.mxu0 %v325_v0  ;;  %v233_v19 = vpack.c.bf16 %v56_v18, %v55_v17  ;;  %v58_v21 = vld [vmem:[#allocation5 + $0x68] sm:$0xff]  ;;  %v59_v23 = vld [vmem:[#allocation5 + $0x70] sm:$0xff]  ;;  %v60_v24 = vld [vmem:[#allocation5 + $0x78] sm:$0xff] }
  0x2d   :  { %v236_v22 = vpack.c.bf16 %v58_v21, %v57_v20  ;;  %v239_v25 = vpack.c.bf16 %v60_v24, %v59_v23  ;;  %v44_v26 = vld [vmem:[#allocation2] sm:$0xff]  ;;  %p300_p5 = por %p299_p4, %p298_p3 }
  0x2e   :  { %v163_v27 = vld [vmem:[%s398_s2] ss:$0 sm:$0xff] }
  0x2f   :  { %v164_v29 = vld [vmem:[%s399_s3] ss:$0 sm:$0xff]  ;;  %p301_p6 = pnand %p300_p5, %p294_p2 }
  0x33   :  { %222 = vmatpush3.bf16.xpose.msra.mxu0 %v221_v7 }
  0x34   :  { %223 = vmatprep.subr.bf16.mxu0 %v325_v0 }
  0x3b   :  { %225 = vmatpush3.bf16.xpose.msra.mxu0 %v224_v10 }
  0x3c   :  { %226 = vmatprep.subr.bf16.mxu0 %v325_v0 }
  0x43   :  { %228 = vmatpush3.bf16.xpose.msra.mxu0 %v227_v13 }
  0x44   :  { %229 = vmatprep.subr.bf16.mxu0 %v325_v0 }
  0x4b   :  { %231 = vmatpush3.bf16.xpose.msra.mxu0 %v230_v16 }
  0x4c   :  { %232 = vmatprep.subr.bf16.mxu0 %v325_v0 }
  0x53   :  { %234 = vmatpush3.bf16.xpose.msra.mxu0 %v233_v19 }
  0x54   :  { %235 = vmatprep.subr.bf16.mxu0 %v325_v0 }
  0x5b   :  { %237 = vmatpush3.bf16.xpose.msra.mxu0 %v236_v22 }
  0x5c   :  { %238 = vmatprep.subr.bf16.mxu0 %v325_v0 }
  0x63   :  { %240 = vmatpush3.bf16.xpose.msra.mxu0 %v239_v25 }
  0x6a   :  { %215 = vmatmul.mubr.f32.vlgmr.msra.gmra.mrb[0].mxu0 %v44_v26 }
 0x13d   :  { %v134_v28 = vpop.f32.mrb[0].mxu0 }
 0x13e   :  { %v135_v30 = vadd.f32 %v163_v27, %v134_v28  ;;  %v216_v31 = vpop.f32.mrb[1].mxu0 }
 0x140   :  { %v145_v32 = vmul.f32 %v164_v29, %v135_v30 }
 0x142   :  { %146 = vst [vmem:[#allocation7] sm:$0xff] %v145_v32 }
 0x143   :  { %304 = shalt.err (!%p301_p6)
}
 0x144   :  { %s305_s22 = scalar_lea.hbm %s400_s4, 128 }
 0x145   :  { %p306_p7 = scmp.ne.s32.totalorder %s400_s4, %s305_s22  ;;  %p309_p8 = scmp.lt.u32.totalorder %s305_s22, %s400_s4 }
 0x147   :  { %p311_p9 = pnand %p309_p8, %p306_p7 }
 0x149   :  { %314 = shalt.err (!%p311_p9)
}
 0x14a   :  { %156 = dma.vmem_to_hbm [thread:$0]  %s154_s19, 128, %s400_s4, [#allocation4]  }
 0x14b   :  { %319 = dma.done.wait [#allocation4], 128  }
 0x14c   :  { %320 = vsyncadd [#allocation4], 4294967168 }
 0x14d   :  { %160 = vsyncpa [#allocation3], 1 }
 0x14e   :  { %161 = vsyncpa [#allocation6], 1 }
 0x14f   :  { %162 = vsyncpa [#allocation4], 1 }

</bundles_post_ra>
